<compile_context>
chip_gen: v7x
topology: tpu7x:2x2x1
jax: 0.10.0
libtpu: 0.0.40
codegen_flags: <defaults>
</compile_context>

<pallas_src>
import jax
import jax.numpy as jnp
import numpy as np
from jax.experimental import pallas as pl
from jax.experimental.pallas import tpu as pltpu


def time2vec_trend_kernel(w0_ref, b0_ref, t_ref, out_ref):
    """One grid step: trend = w0 * t + b0 over a lane-dense [1, TM] tile.

    w0_ref, b0_ref : (1, 1) scalars in SMEM
    t_ref, out_ref : [1, TM] lane-dense tiles in VMEM
    """
    out_ref[...] = w0_ref[0, 0] * t_ref[...] + b0_ref[0, 0]


def _choose_tiling(M, *, target_bytes=2 << 20):
    """Pick the lane-tile width.  Returns (lanes, n_steps, M_pad)."""
    SMALL = 1024
    if M <= SMALL:
        # Single full-extent block (block == array): no padding, one step.
        return M, 1, M
    bytes_per_lane = 8  # 4 B t read + 4 B trend write per element, f32
    max_lanes = max(128, (target_bytes // bytes_per_lane) // 128 * 128)
    # At least two grid steps so both v7x TensorCores get work on the
    # "parallel" axis; costs one extra ~0.35 us step on v5e/v6e (noise).
    n_steps = max(2, pl.cdiv(M, max_lanes))
    lanes = pl.cdiv(pl.cdiv(M, n_steps), 128) * 128      # multiple of 128
    n_steps = pl.cdiv(M, lanes)
    return lanes, n_steps, n_steps * lanes                # pad < lanes


def time2vec_forward(t, w0, b0, w, b, *, target_bytes=2 << 20):
    """Time2Vec forward.

    t      : [B, T, 1] float32, normalized time in [0, 1]
    w0, b0 : shape (1,) parameters
    w, b   : shape (K,) parameters.  Accepted for interface parity with the
             PyTorch module; forward() zeroes them, so only K = w.shape[0]
             matters (the periodic branch is identically zero).
    returns: [B, T, 1 + K] float32
    """
    B, T, F = t.shape
    assert F == 1, "Time2Vec expects the last feature dim to be 1 (normalized time)."
    K = int(w.shape[0])
    M = B * T

    lanes, n_steps, M_pad = _choose_tiling(M, target_bytes=target_bytes)

    t_row = t.reshape(1, M).astype(jnp.float32)
    if M_pad != M:
        # Only hit for large, non-128-multiple M; stays inside the same jit so
        # XLA fuses it with the reshape.
        t_row = jnp.pad(t_row, ((0, 0), (0, M_pad - M)))

    w0_s = jnp.asarray(w0, jnp.float32).reshape(1, 1)
    b0_s = jnp.asarray(b0, jnp.float32).reshape(1, 1)

    trend_row = pl.pallas_call(
        time2vec_trend_kernel,
        out_shape=jax.ShapeDtypeStruct((1, M_pad), jnp.float32),
        grid=(n_steps,),
        in_specs=[
            pl.BlockSpec(memory_space=pltpu.MemorySpace.SMEM),   # w0 (1,1)
            pl.BlockSpec(memory_space=pltpu.MemorySpace.SMEM),   # b0 (1,1)
            pl.BlockSpec((1, lanes), lambda i: (0, i)),          # t tile (lane-dense)
        ],
        out_specs=pl.BlockSpec((1, lanes), lambda i: (0, i)),
        compiler_params=pltpu.CompilerParams(
            dimension_semantics=("parallel",)),
    )(w0_s, b0_s, t_row)

    # Layout plumbing (free reshape + fused fill/concat) outside the kernel.
    trend = trend_row[0, :M].reshape(B, T, 1)
    # The module zeroes w and b every forward -> periodic = sin(0) == 0 exactly.
    periodic = jnp.zeros((B, T, K), dtype=trend.dtype)
    return jnp.concatenate([trend, periodic], axis=-1)


def time2vec_reference(t, w0, b0, w, b):
    # Mirrors the PyTorch forward: w and b are zeroed before use.
    trend = w0 * t + b0                                              # [B, T, 1]
    periodic = jnp.sin(t * jnp.zeros_like(w) + jnp.zeros_like(b))    # [B, T, K]
    return jnp.concatenate([trend, periodic], axis=-1)


if __name__ == "__main__":
    key = jax.random.PRNGKey(0)
    k_t, k_w0, k_b0, k_w, k_b = jax.random.split(key, 5)

    K = 7  # num_frequency -> output feature dim = 1 + K = 8

    # Deterministic "parameters" (mirroring torch.randn init shapes).
    w0 = jax.random.normal(k_w0, (1,), dtype=jnp.float32)
    b0 = jax.random.normal(k_b0, (1,), dtype=jnp.float32)
    w = jax.random.normal(k_w, (K,), dtype=jnp.float32)
    b = jax.random.normal(k_b, (K,), dtype=jnp.float32)

    fwd = jax.jit(time2vec_forward)

    for (B, T) in [(2, 8), (4, 512)]:
        k_t, sub = jax.random.split(k_t)
        t = jax.random.uniform(sub, (B, T, 1), dtype=jnp.float32)

        out = jax.block_until_ready(fwd(t, w0, b0, w, b))
        ref = time2vec_reference(t, w0, b0, w, b)

        assert out.shape == (B, T, 1 + K)
        np.testing.assert_allclose(np.asarray(out), np.asarray(ref),
                                   rtol=1e-6, atol=1e-6)

    print("KERNEL_OK")
</pallas_src>

<mosaic_0001>
module attributes {stable_mosaic.version = 11 : i64} {
  func.func @time2vec_trend_kernel(%arg0: i32, %arg1: memref<1x1xf32, #tpu.memory_space<smem>>, %arg2: memref<1x1xf32, #tpu.memory_space<smem>>, %arg3: memref<1x16xf32, #tpu.memory_space<vmem>>, %arg4: memref<1x16xf32, #tpu.memory_space<vmem>>) attributes {dimension_semantics = [#tpu.dimension_semantics<parallel>], iteration_bounds = array<i64: 1>, scalar_prefetch = 0 : i64, scratch_operands = 0 : i64, tpu.core_type = #tpu.core_type<tc>, window_params = [{transform_indices = @transform_0, window_bounds = array<i64: 1, 1>}, {transform_indices = @transform_1, window_bounds = array<i64: 1, 1>}, {transform_indices = @transform_2, window_bounds = array<i64: 1, 16>}, {transform_indices = @transform_3, window_bounds = array<i64: 1, 16>}]} {
    %c0 = arith.constant 0 : index
    %c0_0 = arith.constant 0 : index
    %0 = memref.load %arg1[%c0, %c0_0] : memref<1x1xf32, #tpu.memory_space<smem>>
    %c0_1 = arith.constant 0 : index
    %c0_2 = arith.constant 0 : index
    %1 = vector.load %arg3[%c0_1, %c0_2] : memref<1x16xf32, #tpu.memory_space<vmem>>, vector<1x16xf32>
    %2 = vector.broadcast %0 : f32 to vector<1x16xf32>
    %3 = arith.mulf %2, %1 : vector<1x16xf32>
    %c0_3 = arith.constant 0 : index
    %c0_4 = arith.constant 0 : index
    %4 = memref.load %arg2[%c0_3, %c0_4] : memref<1x1xf32, #tpu.memory_space<smem>>
    %5 = vector.broadcast %4 : f32 to vector<1x16xf32>
    %6 = arith.addf %3, %5 : vector<1x16xf32>
    %c0_5 = arith.constant 0 : index
    %c0_6 = arith.constant 0 : index
    %7 = vector.load %arg4[%c0_5, %c0_6] : memref<1x16xf32, #tpu.memory_space<vmem>>, vector<1x16xf32>
    tpu.vector_store %arg4[%c0_5, %c0_6], %6 {strides = array<i32>} : memref<1x16xf32, #tpu.memory_space<vmem>>, vector<1x16xf32>,
    return
  }
  func.func @transform_0(%arg0: i32) -> (i32, i32) {
    %c0_i32 = arith.constant 0 : i32
    %c0_i32_0 = arith.constant 0 : i32
    %c0_i32_1 = arith.constant 0 : i32
    return %c0_i32, %c0_i32_0 : i32, i32
  }
  func.func @transform_1(%arg0: i32) -> (i32, i32) {
    %c0_i32 = arith.constant 0 : i32
    %c0_i32_0 = arith.constant 0 : i32
    %c0_i32_1 = arith.constant 0 : i32
    return %c0_i32, %c0_i32_0 : i32, i32
  }
  func.func @transform_2(%arg0: i32) -> (i32, i32) {
    %c0_i32 = arith.constant 0 : i32
    %c0_i32_0 = arith.constant 0 : i32
    return %c0_i32, %arg0 : i32, i32
  }
  func.func @transform_3(%arg0: i32) -> (i32, i32) {
    %c0_i32 = arith.constant 0 : i32
    %c0_i32_0 = arith.constant 0 : i32
    return %c0_i32, %arg0 : i32, i32
  }
}

</mosaic_0001>

<bundles_post_ra>
// kernel: squeeze.0
= control target key start
LH: loop header
LB: loop body
LE: loop exit
PB: predicated region body
PF: predicated region fallthrough
CT: control target
= control target key end

     0   :  { %s130_s8 = smov 125   ;;  %s131_s9 = smov 126   ;;  %vm7_vm0 = vcmask 7168   ;;  %s221_s0 = inlined_call_operand.vmem [shape: f32[16], index: 0, kind: input, shape index: {}]   ;;  %s222_s1 = inlined_call_operand.vmem [shape: f32[2,8,1], index: 1, kind: output, shape index: {}]  }
   0x1   :  { %v4_v0 = vld [vmem:[%s221_s0] sm:$0x1]  ;;  %s129_s0 = smov 127   ;;  %s132_s10 = smov 124  }
   0x2   :  { %5 = vst [vmem:[#allocation0] sm:$0x1] %v4_v0  ;;  %s133_s11 = smov 123   ;;  %s134_s12 = smov 122  }
   0x3   :  { %s135_s13 = smov 121   ;;  %s136_s14 = smov 120  }
   0x4   :  { %s137_s17 = smov 119   ;;  %s138_s18 = smov 118  }
   0x5   :  { %s139_s19 = smov 117   ;;  %s140_s20 = smov 116  }
   0x6   :  { %s141_s21 = smov 115   ;;  %s142_s22 = smov 114  }
   0x7   :  { %s143_s23 = smov 113  }
   0x9   :  { %v9_v1 = vld [vmem:[#allocation0] sm:$0x1]  }
   0xa   :  { %v21_v2 = vld [vmem:[#allocation0] sm:$0x1]   ;;  %10 = vrot.lane.b32.xlu0 %v9_v1, %s129_s0 }
   0xb   :  { %22 = vrot.lane.b32.xlu1 %v21_v2, %s130_s8  ;;  %v15_v3 = vld [vmem:[#allocation0] sm:$0x1]  }
   0xc   :  { %v27_v4 = vld [vmem:[#allocation0] sm:$0x1]  }
   0xd   :  { %v33_v5 = vld [vmem:[#allocation0] sm:$0x1]  }
   0xe   :  { %16 = vrot.lane.b32.xlu0 %v15_v3, %s131_s9  ;;  %v39_v6 = vld [vmem:[#allocation0] sm:$0x1]  }
   0xf   :  { %28 = vrot.lane.b32.xlu1 %v27_v4, %s132_s10  ;;  %v45_v7 = vld [vmem:[#allocation0] sm:$0x1]  }
  0x10   :  { %v51_v8 = vld [vmem:[#allocation0] sm:$0x1]  }
  0x11   :  { %v57_v9 = vld [vmem:[#allocation0] sm:$0x1]  }
  0x12   :  { %34 = vrot.lane.b32.xlu0 %v33_v5, %s133_s11  ;;  %v63_v10 = vld [vmem:[#allocation0] sm:$0x1]  }
  0x13   :  { %40 = vrot.lane.b32.xlu1 %v39_v6, %s134_s12  ;;  %v6_v11 = vld [vmem:[#allocation0] sm:$0x1]  }
  0x14   :  { %8 = vst.msk [vmem:[%s222_s1] sm:$0x1] %vm7_vm0, %v6_v11   ;;  %v69_v12 = vld [vmem:[#allocation0] sm:$0x1]  }
  0x15   :  { %v75_v13 = vld [vmem:[#allocation0] sm:$0x1]  }
  0x16   :  { %46 = vrot.lane.b32.xlu0 %v45_v7, %s135_s13  ;;  %v81_v14 = vld [vmem:[#allocation0] sm:$0x1]  }
  0x17   :  { %52 = vrot.lane.b32.xlu1 %v51_v8, %s136_s14  ;;  %v87_v15 = vld [vmem:[#allocation0] sm:$0x1]  }
  0x18   :  { %v93_v16 = vld [vmem:[#allocation0] sm:$0x1]  }
  0x1a   :  { %58 = vrot.lane.b32.xlu0 %v57_v9, %s137_s17 }
  0x1b   :  { %64 = vrot.lane.b32.xlu1 %v63_v10, %s138_s18 }
  0x1e   :  { %70 = vrot.lane.b32.xlu0 %v69_v12, %s139_s19 }
  0x1f   :  { %76 = vrot.lane.b32.xlu1 %v75_v13, %s140_s20 }
  0x22   :  { %82 = vrot.lane.b32.xlu0 %v81_v14, %s141_s21 }
  0x23   :  { %88 = vrot.lane.b32.xlu1 %v87_v15, %s142_s22 }
  0x26   :  { %94 = vrot.lane.b32.xlu0 %v93_v16, %s143_s23 }
  0x7c   :  { %v11_v17 = vpop.permute.xlu0 %10  }
  0x7d   :  { %v23_v18 = vpop.permute.xlu1 %22   ;;  %99 = vst.msk [vmem:[%s222_s1 + $0x1] sm:$0x1] %vm7_vm0, %v11_v17  }
  0x7e   :  { %101 = vst.msk [vmem:[%s222_s1 + $0x3] sm:$0x1] %vm7_vm0, %v23_v18  }
  0x80   :  { %v17_v19 = vpop.permute.xlu0 %16  }
  0x81   :  { %v29_v20 = vpop.permute.xlu1 %28   ;;  %100 = vst.msk [vmem:[%s222_s1 + $0x2] sm:$0x1] %vm7_vm0, %v17_v19  }
  0x82   :  { %102 = vst.msk [vmem:[%s222_s1 + $0x4] sm:$0x1] %vm7_vm0, %v29_v20  }
  0x84   :  { %v35_v21 = vpop.permute.xlu0 %34  }
  0x85   :  { %v41_v22 = vpop.permute.xlu1 %40   ;;  %103 = vst.msk [vmem:[%s222_s1 + $0x5] sm:$0x1] %vm7_vm0, %v35_v21  }
  0x86   :  { %104 = vst.msk [vmem:[%s222_s1 + $0x6] sm:$0x1] %vm7_vm0, %v41_v22  }
  0x88   :  { %v47_v23 = vpop.permute.xlu0 %46  }
  0x89   :  { %v53_v24 = vpop.permute.xlu1 %52   ;;  %105 = vst.msk [vmem:[%s222_s1 + $0x7] sm:$0x1] %vm7_vm0, %v47_v23  }
  0x8a   :  { %106 = vst.msk [vmem:[%s222_s1 + $0x8] sm:$0x1] %vm7_vm0, %v53_v24  }
  0x8c   :  { %v59_v25 = vpop.permute.xlu0 %58  }
  0x8d   :  { %v65_v26 = vpop.permute.xlu1 %64   ;;  %107 = vst.msk [vmem:[%s222_s1 + $0x9] sm:$0x1] %vm7_vm0, %v59_v25  }
  0x8e   :  { %108 = vst.msk [vmem:[%s222_s1 + $0xa] sm:$0x1] %vm7_vm0, %v65_v26  }
  0x90   :  { %v71_v27 = vpop.permute.xlu0 %70  }
  0x91   :  { %v77_v28 = vpop.permute.xlu1 %76   ;;  %109 = vst.msk [vmem:[%s222_s1 + $0xb] sm:$0x1] %vm7_vm0, %v71_v27  }
  0x92   :  { %110 = vst.msk [vmem:[%s222_s1 + $0xc] sm:$0x1] %vm7_vm0, %v77_v28  }
  0x94   :  { %v83_v29 = vpop.permute.xlu0 %82  }
  0x95   :  { %v89_v30 = vpop.permute.xlu1 %88   ;;  %111 = vst.msk [vmem:[%s222_s1 + $0xd] sm:$0x1] %vm7_vm0, %v83_v29  }
  0x96   :  { %112 = vst.msk [vmem:[%s222_s1 + $0xe] sm:$0x1] %vm7_vm0, %v89_v30  }
  0x98   :  { %v95_v31 = vpop.permute.xlu0 %94  }
  0x99   :  { %113 = vst.msk [vmem:[%s222_s1 + $0xf] sm:$0x1] %vm7_vm0, %v95_v31  }

// kernel: time2vec_forward.1
= control target key start
LH: loop header
LB: loop body
LE: loop exit
PB: predicated region body
PF: predicated region fallthrough
CT: control target
= control target key end

     0   :  { %vm23_vm0 = vcmask 122880   ;;  %s61_s0 = inlined_call_operand.<no memory space> [shape: f32[1,1], index: 0, kind: input, shape index: {}]   ;;  %s62_s1 = inlined_call_operand.<no memory space> [shape: f32[1,1], index: 1, kind: input, shape index: {}]   ;;  %s63_s2 = inlined_call_operand.vmem [shape: f32[1,16], index: 2, kind: input, shape index: {}]   ;;  %s64_s3 = inlined_call_operand.vmem [shape: f32[1,16], index: 3, kind: output, shape index: {}]  }
   0x1   :  { %v17_v0 = vld [vmem:[%s63_s2] sm:$0x1]  ;;  %v18_v1 = vstv %s61_s0  ;;  %v21_v2 = vstv %s62_s1 }
   0x2   :  { %v19_v3 = vmul.f32 %v18_v1, %v17_v0 }
   0x4   :  { %v22_v4 = vadd.f32 %v21_v2, %v19_v3 }
   0x6   :  { %24 = vst.msk [vmem:[%s64_s3] sm:$0x1] %vm23_vm0, %v22_v4 }

</bundles_post_ra>
